<compile_context>
chip_gen: v7x
topology: tpu7x:2x2x1
jax: 0.10.0
libtpu: 0.0.40
codegen_flags: <defaults>
</compile_context>

<pallas_src>
import jax
import jax.numpy as jnp
from jax.experimental import pallas as pl
from jax.experimental.pallas import tpu as pltpu

EPS = 1e-5
_VMEM_LIMIT = 32 * 1024 * 1024  # safe on v5e/v6e/v7x scoped-VMEM budgets


def _pick_l_tile(L):
    """Largest lane-dense tile that evenly divides L (fallback: full L)."""
    for t in (8192, 4096, 2048, 1024, 512, 256, 128):
        if L % t == 0:
            return t
    return L


def bn_stats_kernel(x_ref, sum_ref, sq_ref):
    """Accumulate per-channel sum and sum-of-squares across the whole grid."""
    @pl.when((pl.program_id(0) == 0) & (pl.program_id(1) == 0))
    def _():
        sum_ref[...] = jnp.zeros_like(sum_ref)
        sq_ref[...] = jnp.zeros_like(sq_ref)

    x = x_ref[...].astype(jnp.float32)                    # (C, TL)
    sum_ref[...] += jnp.sum(x, axis=1, keepdims=True)     # (C, 1)
    sq_ref[...] += jnp.sum(x * x, axis=1, keepdims=True)  # (C, 1)


def grid_ff_kernel(x_ref, w1t_ref, b1_ref, w2t_ref, b2_ref, o_ref):
    """Per (batch, L-tile): relu(W2^T @ relu(W1'^T @ x + b1') + b2), BN folded."""
    x = x_ref[...]                                                       # (C, TL)
    h = jnp.dot(w1t_ref[...], x, preferred_element_type=jnp.float32)    # (H, TL)
    h = jnp.maximum(h + b1_ref[...], 0.0)
    out = jnp.dot(w2t_ref[...], h, preferred_element_type=jnp.float32)  # (Cc, TL)
    out = jnp.maximum(out + b2_ref[...], 0.0)
    o_ref[...] = out.astype(o_ref.dtype)                                 # lane-dense store


@jax.jit
def grid_feed_forward(x, gamma, beta, w1, b1, w2, b2):
    """x: (B, D1, D2, L) float32. Returns (L, B, compression_size)."""
    B, D1, D2, L = x.shape
    C = D1 * D2
    H = w1.shape[1]
    Cc = w2.shape[1]
    TL = _pick_l_tile(L)
    n_l = L // TL

    # Free reshape (contiguous middle-dim merge); NO transpose of x in HBM.
    x3 = x.reshape(B, C, L)

    x_spec = pl.BlockSpec((None, C, TL), lambda b, l: (b, 0, l))
    acc_spec = pl.BlockSpec((C, 1), lambda b, l: (0, 0))

    # ---- Pass 1: global (over B and L) per-channel sum / sumsq. ----
    s1, s2 = pl.pallas_call(
        bn_stats_kernel,
        grid=(B, n_l),
        in_specs=[x_spec],
        out_specs=[acc_spec, acc_spec],
        out_shape=[jax.ShapeDtypeStruct((C, 1), jnp.float32),
                   jax.ShapeDtypeStruct((C, 1), jnp.float32)],
        compiler_params=pltpu.CompilerParams(
            dimension_semantics=("arbitrary", "arbitrary"),
            vmem_limit_bytes=_VMEM_LIMIT),
    )(x3)

    # ---- Fold BatchNorm (training-mode batch stats) into the first Linear. ----
    n = jnp.float32(B * L)
    mean = s1[:, 0] / n
    # One-pass variance with f32 accumulators.
    # TODO(synk): switch to a centered two-pass variance if inputs can carry
    # very large per-channel means (precision of E[x^2]-E[x]^2).
    var = jnp.maximum(s2[:, 0] / n - mean * mean, 0.0)
    scale = gamma * jax.lax.rsqrt(var + EPS)              # (C,)
    shift = beta - mean * scale                           # (C,)
    w1t_f = w1.T * scale[None, :]                         # (H, C)
    b1_f = (b1 + shift @ w1).reshape(H, 1)                # (H, 1)
    w2t = w2.T                                            # (Cc, H)
    b2_c = b2.reshape(Cc, 1)                              # (Cc, 1)

    # ---- Pass 2: fused (BN-folded) Linear+ReLU+Linear+ReLU, tiled over (B, L). ----
    def const_spec(shape):
        return pl.BlockSpec(shape, lambda b, l: (0, 0))   # VMEM-resident params

    out3 = pl.pallas_call(
        grid_ff_kernel,
        grid=(B, n_l),
        in_specs=[x_spec,
                  const_spec((H, C)), const_spec((H, 1)),
                  const_spec((Cc, H)), const_spec((Cc, 1))],
        out_specs=pl.BlockSpec((None, Cc, TL), lambda b, l: (b, 0, l)),
        out_shape=jax.ShapeDtypeStruct((B, Cc, L), jnp.float32),
        compiler_params=pltpu.CompilerParams(
            dimension_semantics=("parallel", "parallel"),
            vmem_limit_bytes=_VMEM_LIMIT),
    )(x3, w1t_f, b1_f, w2t, b2_c)

    # (B, Cc, L) -> (L, B, Cc): permute only the smallest tensor.
    return jnp.transpose(out3, (2, 0, 1))


def _reference(x, gamma, beta, w1, b1, w2, b2):
    B, D1, D2, L = x.shape
    C = D1 * D2
    out = x.reshape(B, C, L)
    mean = jnp.mean(out, axis=(0, 2), keepdims=True)
    var = jnp.mean((out - mean) ** 2, axis=(0, 2), keepdims=True)
    out = (out - mean) / jnp.sqrt(var + EPS)
    out = out * gamma[None, :, None] + beta[None, :, None]
    out = jnp.swapaxes(out, 1, 2)                         # (B, L, C)
    out = jnp.maximum(out @ w1 + b1, 0.0)
    out = jnp.maximum(out @ w2 + b2, 0.0)
    return jnp.swapaxes(out, 0, 1)                        # (L, B, Cc)


if __name__ == "__main__":
    # Small shapes consistent with the forward pass; L=384 exercises the grid
    # (3 lane-dense L-tiles of 128 per batch) and cross-step stats accumulation.
    B, D1, D2, L = 2, 4, 4, 384
    input_size = D1 * D2          # 16
    hidden_size = 32
    compression_size = 8

    key = jax.random.PRNGKey(0)
    kx, kg, kb, kw1, kb1, kw2, kb2 = jax.random.split(key, 7)

    x = jax.random.normal(kx, (B, D1, D2, L), dtype=jnp.float32)

    # Deterministic synthetic parameters (shapes per module __init__).
    gamma = 1.0 + 0.1 * jax.random.normal(kg, (input_size,), dtype=jnp.float32)
    beta = 0.1 * jax.random.normal(kb, (input_size,), dtype=jnp.float32)
    w1 = jax.random.normal(kw1, (input_size, hidden_size), dtype=jnp.float32) * 0.1
    b1 = jax.random.normal(kb1, (hidden_size,), dtype=jnp.float32) * 0.1
    w2 = jax.random.normal(kw2, (hidden_size, compression_size), dtype=jnp.float32) * 0.1
    b2 = jax.random.normal(kb2, (compression_size,), dtype=jnp.float32) * 0.1

    out = jax.block_until_ready(grid_feed_forward(x, gamma, beta, w1, b1, w2, b2))
    ref = _reference(x, gamma, beta, w1, b1, w2, b2)

    assert out.shape == (L, B, compression_size), out.shape
    max_err = float(jnp.max(jnp.abs(out - ref)))
    assert jnp.allclose(out, ref, atol=2e-4, rtol=2e-4), f"mismatch: {max_err}"

    print("KERNEL_OK")
</pallas_src>

<mosaic_0001>
module attributes {stable_mosaic.version = 11 : i64} {
  func.func @bn_stats_kernel(%arg0: i32, %arg1: i32, %arg2: memref<1x16x128xf32, #tpu.memory_space<vmem>>, %arg3: memref<16x1xf32, #tpu.memory_space<vmem>>, %arg4: memref<16x1xf32, #tpu.memory_space<vmem>>) attributes {dimension_semantics = [#tpu.dimension_semantics<arbitrary>, #tpu.dimension_semantics<arbitrary>], iteration_bounds = array<i64: 2, 3>, scalar_prefetch = 0 : i64, scratch_operands = 0 : i64, tpu.core_type = #tpu.core_type<tc>, window_params = [{transform_indices = @transform_0, window_bounds = array<i64: 1, 16, 128>}, {pipeline_mode = #tpu.pipeline_mode<synchronous>, transform_indices = @transform_1, window_bounds = array<i64: 16, 1>}, {pipeline_mode = #tpu.pipeline_mode<synchronous>, transform_indices = @transform_2, window_bounds = array<i64: 16, 1>}]} {
    %c0_i32 = arith.constant 0 : i32
    %0 = arith.cmpi eq, %arg0, %c0_i32 : i32
    %c0_i32_0 = arith.constant 0 : i32
    %1 = arith.cmpi eq, %arg1, %c0_i32_0 : i32
    %2 = arith.andi %0, %1 : i1
    %3 = arith.extui %2 : i1 to i32
    %c0_i32_1 = arith.constant 0 : i32
    %4 = arith.cmpi ne, %3, %c0_i32_1 : i32
    scf.if %4 {
      %cst_13 = arith.constant 0.000000e+00 : f32
      %18 = vector.broadcast %cst_13 : f32 to vector<16x1xf32>
      %c0_14 = arith.constant 0 : index
      %c0_15 = arith.constant 0 : index
      %19 = vector.load %arg3[%c0_14, %c0_15] : memref<16x1xf32, #tpu.memory_space<vmem>>, vector<16x1xf32>
      tpu.vector_store %arg3[%c0_14, %c0_15], %18 {strides = array<i32>} : memref<16x1xf32, #tpu.memory_space<vmem>>, vector<16x1xf32>,
      %cst_16 = arith.constant 0.000000e+00 : f32
      %20 = vector.broadcast %cst_16 : f32 to vector<16x1xf32>
      %c0_17 = arith.constant 0 : index
      %c0_18 = arith.constant 0 : index
      %21 = vector.load %arg4[%c0_17, %c0_18] : memref<16x1xf32, #tpu.memory_space<vmem>>, vector<16x1xf32>
      tpu.vector_store %arg4[%c0_17, %c0_18], %20 {strides = array<i32>} : memref<16x1xf32, #tpu.memory_space<vmem>>, vector<16x1xf32>,
    } else {
    }
    %c0 = arith.constant 0 : index
    %c0_2 = arith.constant 0 : index
    %c0_3 = arith.constant 0 : index
    %5 = vector.load %arg2[%c0, %c0_2, %c0_3] : memref<1x16x128xf32, #tpu.memory_space<vmem>>, vector<1x16x128xf32>
    %6 = vector.shape_cast %5 : vector<1x16x128xf32> to vector<16x128xf32>
    %c0_4 = arith.constant 0 : index
    %c0_5 = arith.constant 0 : index
    %7 = vector.load %arg3[%c0_4, %c0_5] : memref<16x1xf32, #tpu.memory_space<vmem>>, vector<16x1xf32>
    %cst = arith.constant dense<0.000000e+00> : vector<16xf32>
    %8 = vector.multi_reduction <add>, %6, %cst [1] : vector<16x128xf32> to vector<16xf32>
    %9 = vector.shape_cast %8 : vector<16xf32> to vector<16x1xf32>
    %10 = arith.addf %7, %9 : vector<16x1xf32>
    %c0_6 = arith.constant 0 : index
    %c0_7 = arith.constant 0 : index
    %11 = vector.load %arg3[%c0_6, %c0_7] : memref<16x1xf32, #tpu.memory_space<vmem>>, vector<16x1xf32>
    tpu.vector_store %arg3[%c0_6, %c0_7], %10 {strides = array<i32>} : memref<16x1xf32, #tpu.memory_space<vmem>>, vector<16x1xf32>,
    %c0_8 = arith.constant 0 : index
    %c0_9 = arith.constant 0 : index
    %12 = vector.load %arg4[%c0_8, %c0_9] : memref<16x1xf32, #tpu.memory_space<vmem>>, vector<16x1xf32>
    %13 = arith.mulf %6, %6 : vector<16x128xf32>
    %cst_10 = arith.constant dense<0.000000e+00> : vector<16xf32>
    %14 = vector.multi_reduction <add>, %13, %cst_10 [1] : vector<16x128xf32> to vector<16xf32>
    %15 = vector.shape_cast %14 : vector<16xf32> to vector<16x1xf32>
    %16 = arith.addf %12, %15 : vector<16x1xf32>
    %c0_11 = arith.constant 0 : index
    %c0_12 = arith.constant 0 : index
    %17 = vector.load %arg4[%c0_11, %c0_12] : memref<16x1xf32, #tpu.memory_space<vmem>>, vector<16x1xf32>
    tpu.vector_store %arg4[%c0_11, %c0_12], %16 {strides = array<i32>} : memref<16x1xf32, #tpu.memory_space<vmem>>, vector<16x1xf32>,
    return
  }
  func.func @transform_0(%arg0: i32, %arg1: i32) -> (i32, i32, i32) {
    %c0_i32 = arith.constant 0 : i32
    %c0_i32_0 = arith.constant 0 : i32
    return %arg0, %c0_i32, %arg1 : i32, i32, i32
  }
  func.func @transform_1(%arg0: i32, %arg1: i32) -> (i32, i32) {
    %c0_i32 = arith.constant 0 : i32
    %c0_i32_0 = arith.constant 0 : i32
    %c0_i32_1 = arith.constant 0 : i32
    return %c0_i32, %c0_i32_0 : i32, i32
  }
  func.func @transform_2(%arg0: i32, %arg1: i32) -> (i32, i32) {
    %c0_i32 = arith.constant 0 : i32
    %c0_i32_0 = arith.constant 0 : i32
    %c0_i32_1 = arith.constant 0 : i32
    return %c0_i32, %c0_i32_0 : i32, i32
  }
}

module attributes {stable_mosaic.version = 11 : i64} {
  func.func @grid_ff_kernel(%arg0: i32, %arg1: i32, %arg2: memref<1x16x128xf32, #tpu.memory_space<vmem>>, %arg3: memref<32x16xf32, #tpu.memory_space<vmem>>, %arg4: memref<32x1xf32, #tpu.memory_space<vmem>>, %arg5: memref<8x32xf32, #tpu.memory_space<vmem>>, %arg6: memref<8x1xf32, #tpu.memory_space<vmem>>, %arg7: memref<1x8x128xf32, #tpu.memory_space<vmem>>) attributes {dimension_semantics = [#tpu.dimension_semantics<parallel>, #tpu.dimension_semantics<parallel>], iteration_bounds = array<i64: 2, 3>, scalar_prefetch = 0 : i64, scratch_operands = 0 : i64, tpu.core_type = #tpu.core_type<tc>, window_params = [{transform_indices = @transform_0, window_bounds = array<i64: 1, 16, 128>}, {pipeline_mode = #tpu.pipeline_mode<synchronous>, transform_indices = @transform_1, window_bounds = array<i64: 32, 16>}, {pipeline_mode = #tpu.pipeline_mode<synchronous>, transform_indices = @transform_2, window_bounds = array<i64: 32, 1>}, {pipeline_mode = #tpu.pipeline_mode<synchronous>, transform_indices = @transform_3, window_bounds = array<i64: 8, 32>}, {pipeline_mode = #tpu.pipeline_mode<synchronous>, transform_indices = @transform_4, window_bounds = array<i64: 8, 1>}, {transform_indices = @transform_5, window_bounds = array<i64: 1, 8, 128>}]} {
    %c0 = arith.constant 0 : index
    %c0_0 = arith.constant 0 : index
    %c0_1 = arith.constant 0 : index
    %0 = vector.load %arg2[%c0, %c0_0, %c0_1] : memref<1x16x128xf32, #tpu.memory_space<vmem>>, vector<1x16x128xf32>
    %1 = vector.shape_cast %0 : vector<1x16x128xf32> to vector<16x128xf32>
    %c0_2 = arith.constant 0 : index
    %c0_3 = arith.constant 0 : index
    %2 = vector.load %arg3[%c0_2, %c0_3] : memref<32x16xf32, #tpu.memory_space<vmem>>, vector<32x16xf32>
    %cst = arith.constant dense<0.000000e+00> : vector<32x128xf32>
    %3 = tpu.matmul %2, %1, %cst {dimension_numbers = #tpu.dot_dimension_numbers<[1], [0], [0], [1], [0, 0, 1, 1], [], []>} : vector<32x16xf32>, vector<16x128xf32>, vector<32x128xf32> -> vector<32x128xf32>
    %c0_4 = arith.constant 0 : index
    %c0_5 = arith.constant 0 : index
    %4 = vector.load %arg4[%c0_4, %c0_5] : memref<32x1xf32, #tpu.memory_space<vmem>>, vector<32x1xf32>
    %5 = vector.broadcast %4 : vector<32x1xf32> to vector<32x128xf32>
    %6 = arith.addf %3, %5 : vector<32x128xf32>
    %cst_6 = arith.constant 0.000000e+00 : f32
    %7 = vector.broadcast %cst_6 : f32 to vector<32x128xf32>
    %8 = arith.maximumf %6, %7 : vector<32x128xf32>
    %c0_7 = arith.constant 0 : index
    %c0_8 = arith.constant 0 : index
    %9 = vector.load %arg5[%c0_7, %c0_8] : memref<8x32xf32, #tpu.memory_space<vmem>>, vector<8x32xf32>
    %cst_9 = arith.constant dense<0.000000e+00> : vector<8x128xf32>
    %10 = tpu.matmul %9, %8, %cst_9 {dimension_numbers = #tpu.dot_dimension_numbers<[1], [0], [0], [1], [0, 0, 1, 1], [], []>} : vector<8x32xf32>, vector<32x128xf32>, vector<8x128xf32> -> vector<8x128xf32>
    %c0_10 = arith.constant 0 : index
    %c0_11 = arith.constant 0 : index
    %11 = vector.load %arg6[%c0_10, %c0_11] : memref<8x1xf32, #tpu.memory_space<vmem>>, vector<8x1xf32>
    %12 = vector.broadcast %11 : vector<8x1xf32> to vector<8x128xf32>
    %13 = arith.addf %10, %12 : vector<8x128xf32>
    %cst_12 = arith.constant 0.000000e+00 : f32
    %14 = vector.broadcast %cst_12 : f32 to vector<8x128xf32>
    %15 = arith.maximumf %13, %14 : vector<8x128xf32>
    %c0_13 = arith.constant 0 : index
    %c0_14 = arith.constant 0 : index
    %c0_15 = arith.constant 0 : index
    %16 = vector.load %arg7[%c0_13, %c0_14, %c0_15] : memref<1x8x128xf32, #tpu.memory_space<vmem>>, vector<1x8x128xf32>
    %17 = vector.shape_cast %16 : vector<1x8x128xf32> to vector<8x128xf32>
    %18 = vector.shape_cast %15 : vector<8x128xf32> to vector<1x8x128xf32>
    tpu.vector_store %arg7[%c0_13, %c0_14, %c0_15], %18 {strides = array<i32>} : memref<1x8x128xf32, #tpu.memory_space<vmem>>, vector<1x8x128xf32>,
    return
  }
  func.func @transform_0(%arg0: i32, %arg1: i32) -> (i32, i32, i32) {
    %c0_i32 = arith.constant 0 : i32
    %c0_i32_0 = arith.constant 0 : i32
    return %arg0, %c0_i32, %arg1 : i32, i32, i32
  }
  func.func @transform_1(%arg0: i32, %arg1: i32) -> (i32, i32) {
    %c0_i32 = arith.constant 0 : i32
    %c0_i32_0 = arith.constant 0 : i32
    %c0_i32_1 = arith.constant 0 : i32
    return %c0_i32, %c0_i32_0 : i32, i32
  }
  func.func @transform_2(%arg0: i32, %arg1: i32) -> (i32, i32) {
    %c0_i32 = arith.constant 0 : i32
    %c0_i32_0 = arith.constant 0 : i32
    %c0_i32_1 = arith.constant 0 : i32
    return %c0_i32, %c0_i32_0 : i32, i32
  }
  func.func @transform_3(%arg0: i32, %arg1: i32) -> (i32, i32) {
    %c0_i32 = arith.constant 0 : i32
    %c0_i32_0 = arith.constant 0 : i32
    %c0_i32_1 = arith.constant 0 : i32
    return %c0_i32, %c0_i32_0 : i32, i32
  }
  func.func @transform_4(%arg0: i32, %arg1: i32) -> (i32, i32) {
    %c0_i32 = arith.constant 0 : i32
    %c0_i32_0 = arith.constant 0 : i32
    %c0_i32_1 = arith.constant 0 : i32
    return %c0_i32, %c0_i32_0 : i32, i32
  }
  func.func @transform_5(%arg0: i32, %arg1: i32) -> (i32, i32, i32) {
    %c0_i32 = arith.constant 0 : i32
    %c0_i32_0 = arith.constant 0 : i32
    return %arg0, %c0_i32, %arg1 : i32, i32, i32
  }
}

</mosaic_0001>

<bundles_post_ra>
// kernel: grid_feed_forward.2
= control target key start
LH: loop header
LB: loop body
LE: loop exit
PB: predicated region body
PF: predicated region fallthrough
CT: control target
= control target key end

     0   :  { %s409_s9 = smov 0   ;;  %s411_s10 = smov 0   ;;  %s531_s0 = inlined_call_operand.vmem [shape: f32[2,16,384], index: 0, kind: input, shape index: {}]   ;;  %s532_s1 = inlined_call_operand.vmem [shape: f32[16,1], index: 1, kind: output, shape index: {0}]   ;;  %s533_s2 = inlined_call_operand.vmem [shape: f32[16,1], index: 2, kind: output, shape index: {1}]  }
   0x1   :  { %s413_s11 = smov 0   ;;  %s415_s12 = smov 0  }
   0x2   :  { %s417_s13 = smov 0   ;;  %s419_s14 = smov 0  }
   0x3   :  { %s421_s15 = smov 0  }
   0x4 LB: > { %s22_s16 = sadd.s32 1, %s383_s13  ;;  %s25_s17 = sadd.s32 1, %s387_s14  ;;  %s391_s15 = sphi %s421_s15, %s13_s15   ;;  %s387_s14 = sphi %s419_s14, %s539_s14   ;;  %s383_s13 = sphi %s417_s13, %s538_s13   ;;  %s379_s12 = sphi %s415_s12, %s537_s12   ;;  %s375_s11 = sphi %s413_s11, %s536_s11   ;;  %s371_s10 = sphi %s411_s10, %s535_s10   ;;  %s367_s9 = sphi %s409_s9, %s534_s9  }
   0x5   : > { %p23_p0 = scmp.ge.s32.totalorder %s22_s16, 3  ;;  %p41_p1 = scmp.ne.s32.totalorder %s371_s10, %s367_s9 }
   0x6   : > { %p42_p2 = scmp.eq.s32.totalorder %s391_s15, 0  ;;  %s34_s21 = sadd.s32 1, %s371_s10 }
   0x7   : > { %s541_s16 = smov (%p23_p0, %s22_s16), 0  ;;  %s543_s17 = smov (!%p23_p0, %s25_s17), %s387_s14 }
   0x8   : > { %p43_p3 = por %p42_p2, %p41_p1  ;;  %p27_p4 = scmp.ge.s32.totalorder %s543_s17, 2 }
   0x9   : > { %s30_s18 = ssub.s32 %s383_s13, %s541_s16  ;;  %p272_p6 = scmp.ge.s32.totalorder %s391_s15, 6 }
   0xa   : > { %s545_s17 = smov (%p27_p4, %s543_s17), 0 }
   0xb   : > { %s29_s19 = ssub.s32 %s387_s14, %s545_s17  ;;  %109 = sbr.rel (%p272_p6) target bundleno = 26 (0x1a), region = 16 }
   0xc   : > { %s31_s20 = sor.u32 %s30_s18, %s29_s19 }
   0xd   : > { %p32_p5 = scmp.eq.s32.totalorder %s31_s20, 0 }
   0xf   : > { %s460_s22 = scalar_select %p32_p5, %s371_s10, %s34_s21  }
  0x12   : > { %112 = sbr.rel (!%p43_p3) target bundleno = 26 (0x1a), region = 20  ;;  %s114_s23 = sand.u32 (%p43_p3), 1, %s371_s10  }
  0x13   : > { %s279_s24 = smul.u32 (%p43_p3), 6, %s387_s14  ;;  %s273_s25 = sshll.u32 (%p43_p3), %s114_s23, 4 }
  0x14   : > { %s116_s3 = scalar_lea.vmem (%p43_p3), [#allocation2], %s273_s25 }
  0x15   : > { %s118_s26 = sadd.s32 (%p43_p3), %s383_s13, %s279_s24 }
  0x16   : > { %s274_s27 = sshll.u32 (%p43_p3), %s118_s26, 3 }
  0x17   : > { %s120_s30 = scalar_lea.vmem (%p43_p3), %s531_s0, %s274_s27 }
  0x18   : > { %v150_v0 = vld [vmem:[%s120_s30] sm:$0xff] (%p43_p3)  ;;  %v152_v1 = vld [vmem:[%s120_s30 + $0x18] sm:$0xff] (%p43_p3) }
  0x19   : > { %151 = vst [vmem:[%s116_s3] sm:$0xff] %v150_v0  ;;  %153 = vst [vmem:[%s116_s3 + $0x8] sm:$0xff] %v152_v1 }
  0x1a PF: > { %p275_p7 = scmp.ge.s32.totalorder %s391_s15, 1  ;;  %p158_p8 = scmp.lt.s32.totalorder %s391_s15, 7 }
  0x1c   : > { %p159_p9 = pnand %p275_p7, %p158_p8 }
  0x1d   : > { %s165_s4 = sand.u32 (!%p159_p9), 1, %s367_s9   ;;  %p181_p10 = scmp.eq.s32.totalorder (!%p159_p9), %s379_s12, 0 }
  0x1e   : > { %162 = sbr.rel (%p159_p9) target bundleno = 196 (0xc4), region = 58  ;;  %s276_s5 = sshll.u32 (!%p159_p9), %s165_s4, 4 }
  0x1f   : > { %p182_p11 = scmp.eq.s32.totalorder (!%p159_p9), %s375_s11, 0  ;;  %s167_s6 = scalar_lea.vmem (!%p159_p9), [#allocation2], %s276_s5 }
  0x21   : > { %p183_p12 = pnand (!%p159_p9), %p182_p11, %p181_p10 }
  0x25   : > { %186 = sbr.rel (%p183_p12) target bundleno = 44 (0x2c), region = 66  ;;  %vm187_vm0 = vcmask (!%p183_p12), 7168   ;;  %v393_v2 = vmov (!%p183_p12), 0.0  }
  0x26   : > { %188 = vst.msk [vmem:[%s532_s1] sm:$0xff] (!%p183_p12), %vm187_vm0, %v393_v2  ;;  %189 = vst.msk [vmem:[%s532_s1 + $0x8] sm:$0xff] (!%p183_p12), %vm187_vm0, %v393_v2 }
  0x27   : > { %190 = vst.msk [vmem:[%s533_s2] sm:$0xff] (!%p183_p12), %vm187_vm0, %v393_v2  ;;  %191 = vst.msk [vmem:[%s533_s2 + $0x8] sm:$0xff] (!%p183_p12), %vm187_vm0, %v393_v2 }
  0x2c PF: > { %v192_v3 = vld [vmem:[%s167_s6] sm:$0xff]  ;;  %v193_v4 = vld [vmem:[%s167_s6 + $0x8] sm:$0xff]  ;;  %vm202_vm1 = vcmask 7168  }
  0x2d   : > { %196 = vadd.xlane.f32.xlu0 %v192_v3  ;;  %v207_v5 = vmul.f32 %v192_v3, %v192_v3  ;;  %v208_v6 = vmul.f32 %v193_v4, %v193_v4  ;;  %v194_v7 = vld [vmem:[%s532_s1] sm:$0xff]  ;;  %v195_v12 = vld [vmem:[%s532_s1 + $0x8] sm:$0xff] }
  0x2e   : > { %v205_v9 = vld [vmem:[%s533_s2] sm:$0xff]  ;;  %v206_v15 = vld [vmem:[%s533_s2 + $0x8] sm:$0xff] }
  0x2f   : > { %209 = vadd.xlane.f32.xlu1 %v207_v5 }
  0x31   : > { %198 = vadd.xlane.f32.xlu0 %v193_v4 }
  0x33   : > { %211 = vadd.xlane.f32.xlu1 %v208_v6 }
  0xba   : > { %v197_v8 = vpop.xlane.xlu0 %196 }
  0xbb   : > { %v200_v10 = vadd.f32 %v197_v8, %v194_v7 }
  0xbc   : > { %v210_v11 = vpop.xlane.xlu1 %209 }
  0xbd   : > { %203 = vst.msk [vmem:[%s532_s1] sm:$0xff] %vm202_vm1, %v200_v10  ;;  %v213_v13 = vadd.f32 %v210_v11, %v205_v9 }
  0xbe   : > { %v199_v14 = vpop.xlane.xlu0 %198 }
  0xbf   : > { %215 = vst.msk [vmem:[%s533_s2] sm:$0xff] %vm202_vm1, %v213_v13  ;;  %v201_v16 = vadd.f32 %v199_v14, %v195_v12 }
  0xc0   : > { %v212_v17 = vpop.xlane.xlu1 %211 }
  0xc1   : > { %204 = vst.msk [vmem:[%s532_s1 + $0x8] sm:$0xff] %vm202_vm1, %v201_v16  ;;  %v214_v18 = vadd.f32 %v212_v17, %v206_v15 }
  0xc3   : > { %216 = vst.msk [vmem:[%s533_s2 + $0x8] sm:$0xff] %vm202_vm1, %v214_v18 }
  0xc4 PF: > { %s13_s15 = sadd.s32 1, %s391_s15   ;;  %s534_s9 = smov %s371_s10 }
  0xc5   : > { %p10_p13 = scmp.ge.s32.totalorder %s13_s15, 8   ;;  %s535_s10 = smov %s460_s22 }
  0xc6   : > { %s536_s11 = smov %s383_s13  ;;  %s537_s12 = smov %s387_s14 }
  0xc7   : > { %s538_s13 = smov %s541_s16  ;;  %s539_s14 = smov %s545_s17 }
  0xc8   :  { %12 = sbr.rel (!%p10_p13) target bundleno = 4 (0x4), region = 105 }

// kernel: grid_feed_forward.3
= control target key start
LH: loop header
LB: loop body
LE: loop exit
PB: predicated region body
PF: predicated region fallthrough
CT: control target
= control target key end

     0   :  { %10 = vsyncpa [#allocation4], 0  ;;  %s1043_s0 = inlined_call_operand.vmem [shape: f32[2,16,384], index: 0, kind: input, shape index: {}]   ;;  %s1044_s1 = inlined_call_operand.vmem [shape: f32[32,16], index: 1, kind: input, shape index: {}]   ;;  %s1045_s2 = inlined_call_operand.vmem [shape: f32[32,1], index: 2, kind: input, shape index: {}]   ;;  %s1046_s3 = inlined_call_operand.vmem [shape: f32[8,32], index: 3, kind: input, shape index: {}]   ;;  %s1047_s4 = inlined_call_operand.vmem [shape: f32[8,1], index: 4, kind: input, shape index: {}]   ;;  %s1048_s5 = inlined_call_operand.hbm [shape: f32[2,8,384], index: 5, kind: output, shape index: {}]  }
   0x1   :  { %12 = vsyncpa [#allocation4 + $0x1], 0  ;;  %s860_s18 = smov 0   ;;  %s862_s19 = smov 0  }
   0x2   :  { %s864_s20 = smov 0   ;;  %s866_s21 = smov 0  }
   0x3   :  { %s868_s22 = smov 0   ;;  %s870_s23 = smov 0  }
   0x4   :  { %s872_s24 = smov 0   ;;  %s874_s25 = smov 0  }
   0x5 LB: > { %s590_s26 = sadd.s32 4294967295, %s823_s25   ;;  %s591_s27 = sadd.s32 4294967294, %s823_s25   ;;  %s823_s25 = sphi %s874_s25, %s18_s25   ;;  %s819_s24 = sphi %s872_s24, %s1058_s24   ;;  %s815_s23 = sphi %s870_s23, %s1057_s23   ;;  %s811_s22 = sphi %s868_s22, %s1056_s22   ;;  %s807_s21 = sphi %s866_s21, %s1055_s21   ;;  %s803_s20 = sphi %s864_s20, %s1054_s20   ;;  %s799_s19 = sphi %s862_s19, %s1053_s19   ;;  %s795_s18 = sphi %s860_s18, %s1052_s18  }
   0x6   : > { %s27_s28 = sadd.s32 1, %s815_s23  ;;  %s30_s29 = sadd.s32 1, %s819_s24 }
   0x7   : > { %p28_p0 = scmp.ge.s32.totalorder %s27_s28, 3  ;;  %p46_p1 = scmp.ne.s32.totalorder %s803_s20, %s799_s19 }
   0x8   : > { %p47_p2 = scmp.eq.s32.totalorder %s823_s25, 0  ;;  %p162_p5 = scmp.eq.s32.totalorder %s590_s26, 5 }
   0x9   : > { %s1060_s28 = smov (%p28_p0, %s27_s28), 0  ;;  %s1062_s29 = smov (!%p28_p0, %s30_s29), %s819_s24 }
   0xa   : > { %s35_s30 = ssub.s32 %s815_s23, %s1060_s28  ;;  %p912_p3 = por %p47_p2, %p46_p1 }
   0xb   : > { %p32_p4 = scmp.ge.s32.totalorder %s1062_s29, 2  ;;  %p167_p6 = scmp.ne.s32.totalorder %s799_s19, %s795_s18 }
   0xc   : > { %p168_p7 = scmp.eq.s32.totalorder %s591_s27, 5  ;;  %p920_p8 = por %p162_p5, %p46_p1 }
   0xd   : > { %s1064_s29 = smov (%p32_p4, %s1062_s29), 0  ;;  %s39_s11 = sadd.s32 1, %s803_s20 }
   0xe   : > { %p924_p9 = por %p168_p7, %p167_p6  ;;  %s34_s9 = ssub.s32 %s819_s24, %s1064_s29 }
   0xf   : > { %s36_s10 = sor.u32 %s35_s30, %s34_s9  ;;  %p593_p11 = scmp.ge.s32.totalorder %s823_s25, 6 }
  0x10   : > { %p37_p10 = scmp.eq.s32.totalorder %s36_s10, 0 }
  0x11   : > { %196 = sbr.rel (%p593_p11) target bundleno = 32 (0x20), region = 32 }
  0x12   : > { %s932_s12 = scalar_select %p37_p10, %s803_s20, %s39_s11  }
  0x18   : > { %199 = sbr.rel (!%p912_p3) target bundleno = 32 (0x20), region = 36  ;;  %s201_s13 = sand.u32 (%p912_p3), 1, %s803_s20  }
  0x19   : > { %s650_s14 = smul.u32 (%p912_p3), 6, %s819_s24  ;;  %s594_s15 = sshll.u32 (%p912_p3), %s201_s13, 4 }
  0x1a   : > { %s203_s9 = scalar_lea.vmem (%p912_p3), [#allocation2], %s594_s15 }
  0x1b   : > { %s205_s16 = sadd.s32 (%p912_p3), %s815_s23, %s650_s14 }
  0x1c   : > { %s595_s17 = sshll.u32 (%p912_p3), %s205_s16, 3 }
  0x1d   : > { %s207_s30 = scalar_lea.vmem (%p912_p3), %s1043_s0, %s595_s17 }
  0x1e   : > { %v237_v0 = vld [vmem:[%s207_s30] sm:$0xff] (%p912_p3)  ;;  %v239_v1 = vld [vmem:[%s207_s30 + $0x18] sm:$0xff] (%p912_p3) }
  0x1f   : > { %238 = vst [vmem:[%s203_s9] sm:$0xff] %v237_v0  ;;  %240 = vst [vmem:[%s203_s9 + $0x8] sm:$0xff] %v239_v1 }
  0x20 PF: > { %p596_p12 = scmp.ge.s32.totalorder %s823_s25, 1  ;;  %p245_p13 = scmp.lt.s32.totalorder %s823_s25, 7 }
  0x22   : > { %p246_p0 = pnand %p596_p12, %p245_p13 }
  0x23   : > { %s946_s6 = sand.u32 (!%p246_p0), 1, %s799_s19   ;;  %v281_v2 = vld [vmem:[%s1044_s1] sm:$0xff] (!%p246_p0)  ;;  %vm309_vm0 = vcmask (!%p246_p0), 130048   ;;  %v825_v3 = vmov (!%p246_p0), 0   ;;  %v287_v5 = vld [vmem:[%s1045_s2 + $0x10] sm:$0xff] (!%p246_p0)  ;;  %v286_v8 = vld [vmem:[%s1045_s2 + $0x8] sm:$0xff] (!%p246_p0) }
  0x24   : > { %249 = sbr.rel (%p246_p0) target bundleno = 501 (0x1f5), region = 74  ;;  %s597_s13 = sshll.u32 (!%p246_p0), %s946_s6, 4  ;;  %623 = vmatprep.mubr.msk.f32.mxu0 (!%p246_p0), %vm309_vm0, %v281_v2  ;;  %727 = vset.pattern.permute.xlu0 (!%p246_p0), %v825_v3  ;;  %v285_v4 = vld [vmem:[%s1045_s2] sm:$0xff] (!%p246_p0)  ;;  %v288_v10 = vld [vmem:[%s1045_s2 + $0x18] sm:$0xff] (!%p246_p0)  ;;  %v282_v11 = vld [vmem:[%s1044_s1 + $0x8] sm:$0xff] (!%p246_p0)  ;;  %v826_v15 = vmov (!%p246_p0), 0.0|0.0  }
  0x25   : > { %291 = vperm.xlu0 (!%p246_p0), %727, %v285_v4   ;;  %728 = vset.pattern.permute.xlu1 (!%p246_p0), %v825_v3  ;;  %s254_s26 = scalar_lea.vmem (!%p246_p0), [#allocation2], %s597_s13  ;;  %v412_v12 = vld [vmem:[%s1047_s4] sm:$0xff] (!%p246_p0)  ;;  %v283_v13 = vld [vmem:[%s1044_s1 + $0x10] sm:$0xff] (!%p246_p0)  ;;  %v284_v14 = vld [vmem:[%s1044_s1 + $0x18] sm:$0xff] (!%p246_p0)  ;;  %vm827_vm1 = vmmov (!%p246_p0), 0   ;;  %v828_v16 = vmov (!%p246_p0), 0.0  }
  0x26   : > { %v279_v6 = vld [vmem:[%s254_s26] sm:$0xff] (!%p246_p0)  ;;  %v280_v7 = vld [vmem:[%s254_s26 + $0x8] sm:$0xff] (!%p246_p0)  ;;  %301 = vperm.xlu1 (!%p246_p0), %728, %v287_v5   ;;  %644 = vmatprep.subr.bf16.mxu1 (!%p246_p0), %v826_v15  ;;  %vm418_vm2 = vcmask (!%p246_p0), 261120   ;;  %s651_s10 = smul.u32 (!%p246_p0), 3, %s811_s22  ;;  %s598_s11 = sshll.u32 (!%p246_p0), %s946_s6, 3 }
  0x27   : > { %v640_v9 = vpack.c.bf16 (!%p246_p0), %v280_v7, %v279_v6  ;;  %637 = vmatprep.mubr.msk.f32.mxu1 (!%p246_p0), %vm827_vm1, %v828_v16  ;;  %v411_v35 = vld [vmem:[%s1046_s3] sm:$0xff] (!%p246_p0)  ;;  %s278_s15 = scalar_lea.vmem (!%p246_p0), [#allocation3], %s598_s11  ;;  %s829_s30 = smov (!%p246_p0), [#allocation3]  }
  0x28   : > { %s506_s14 = sadd.s32 (!%p246_p0), %s807_s21, %s651_s10  ;;  %s510_s16 = sshll.u32 (!%p246_p0), %s278_s15, 4  ;;  %s991_s16 = int_to_ptr.vmem [resolvable:$true] %s510_s16 }
  0x29   : > { %641 = vmatprep.subr.bf16.mxu0 (!%p246_p0), %v640_v9  ;;  %296 = vperm.xlu0 (!%p246_p0), %727, %v286_v8   ;;  %s605_s13 = sshll.u32 (!%p246_p0), %s506_s14, 7  ;;  %s495_s21 = scalar_lea.sflag (!%p246_p0), [#allocation4], %s946_s6 }
  0x2a   : > { %643 = vmatpush3.bf16.msra.mxu0 (!%p246_p0), %v640_v9  ;;  %306 = vperm.xlu1 (!%p246_p0), %728, %v288_v10   ;;  %s989_s27 = scalar_lea.hbm (!%p246_p0), %s1048_s5, %s605_s13  ;;  %s729_s22 = scalar_lea.vmem (!%p246_p0), %s991_s16, 128 }
  0x2b   : > { %p730_p1 = scmp.ne.s32.totalorder %s991_s16, %s729_s22  ;;  %s733_s9 = sshll.u32 %s829_s30, 4  ;;  %s734_s9 = int_to_ptr.vmem [resolvable:$false] %s733_s9 }
  0x2c   : > { %s735_s10 = scalar_lea.vmem %s734_s9, 256  ;;  %p736_p4 = scmp.lt.s32.totalorder %s991_s16, %s734_s9 }
  0x2d   : > { %624 = vmatmul.mubr.msk.f32.vlgmr.msra.gmra.mrb[0].mxu0 %vm309_vm0, %v282_v11  ;;  %415 = vperm.xlu0 %727, %v412_v12   ;;  %p731_p2 = pnand %p730_p1, %p920_p8  ;;  %p737_p5 = scmp.lt.s32.totalorder %s735_s10, %s729_s22 }
  0x2e   : > { %626 = vmatprep.mubr.msk.f32.mxu0 %vm309_vm0, %v283_v13 }
  0x2f   : > { %p732_p3 = pneg %p731_p2  ;;  %p738_p6 = por %p737_p5, %p736_p4 }
  0x31   : > { %627 = vmatmul.mubr.msk.f32.gmra.mrb[2].mxu0 %vm309_vm0, %v284_v14  ;;  %p739_p7 = pnand %p738_p6, %p732_p3 }
  0xa4   : > { %v292_v17 = vpop.permute.xlu0 %291 }
  0xa5   : > { %v302_v18 = vpop.permute.xlu1 %301 }
  0xa8   : > { %v297_v19 = vpop.permute.xlu0 %296 }
  0xa9   : > { %v307_v25 = vpop.permute.xlu1 %306 }
  0xac   : > { %v416_v36 = vpop.permute.xlu0 %415 }
 0x100   : > { %v625_v20 = vpop.f32.mrb[0].mxu0 }
 0x101   : > { %v394_v21 = vadd.f32 %v625_v20, %v297_v19  ;;  %v388_v22 = vpop.f32.mrb[1].mxu0 }
 0x102   : > { %v389_v23 = vadd.f32 %v388_v22, %v292_v17 }
 0x103   : > { %v408_v24 = vmax.f32 %v394_v21, 0.0 }
 0x104   : > { %v407_v26 = vmax.f32 %v389_v23, 0.0  ;;  %v628_v27 = vpop.f32.mrb[2].mxu0 }
 0x105   : > { %v404_v28 = vadd.f32 %v628_v27, %v307_v25  ;;  %v398_v29 = vpop.f32.mrb[3].mxu0 }
 0x106   : > { %v399_v30 = vadd.f32 %v398_v29, %v302_v18  ;;  %v645_v31 = vpack.c.bf16 %v408_v24, %v407_v26 }
 0x107   : > { %v410_v32 = vmax.f32 %v404_v28, 0.0 }
 0x108   : > { %v409_v33 = vmax.f32 %v399_v30, 0.0  ;;  %646 = vmatpush3.bf16.msra.mxu1 %v645_v31 }
 0x109   : > { %647 = vmatprep.subr.bf16.mxu1 %v826_v15 }
 0x10a   : > { %v648_v34 = vpack.c.bf16 %v410_v32, %v409_v33 }
 0x10c   : > { %649 = vmatpush3.bf16.msra.mxu1 %v648_v34 }
 0x10f   : > { %638 = vmatmul.mubr.msk.f32.vlgmr.msra.gmra.mrb[0].mxu1 %vm418_vm2, %v411_v35 }
 0x1e2   : > { %v488_v37 = vpop.f32.mrb[0].mxu1 }
 0x1e3   : > { %v489_v38 = vadd.f32 %v488_v37, %v416_v36  ;;  %v639_v39 = vpop.f32.mrb[1].mxu1 }
 0x1e5   : > { %v492_v40 = vmax.f32 %v489_v38, 0.0 }
 0x1e7   : > { %493 = vst [vmem:[%s278_s15] sm:$0xff] %v492_v40 }
 0x1e8   : > { %742 = shalt.err (!%p739_p7)
}
 0x1e9   : > { %s743_s6 = scalar_lea.hbm %s989_s27, 128  ;;  %s747_s13 = scalar_lea.hbm %s1048_s5, 768 }
 0x1ea   : > { %p744_p10 = scmp.ne.s32.totalorder %s989_s27, %s743_s6  ;;  %p748_p13 = scmp.lt.u32.totalorder %s989_s27, %s1048_s5 }
 0x1eb   : > { %p749_p0 = scmp.lt.u32.totalorder %s747_s13, %s743_s6  ;;  %p751_p2 = scmp.lt.u32.totalorder %s743_s6, %s989_s27 }
 0x1ec   : > { %p745_p11 = pnand %p744_p10, %p920_p8 }
 0x1ed   : > { %p750_p1 = por %p749_p0, %p748_p13 }
 0x1ee   : > { %p746_p12 = pneg %p745_p11 }
 0x1ef   : > { %p752_p3 = por %p751_p2, %p750_p1 }
 0x1f1   : > { %p753_p4 = pnand %p752_p3, %p746_p12 }
 0x1f3   : > { %756 = shalt.err (!%p753_p4)
}
 0x1f4   : > { %652 = dma.vmem_to_hbm [thread:$0]  (%p920_p8), %s991_s16, 128, %s989_s27, %s495_s21  }
 0x1f5 PF: > { %p658_p5 = scmp.ge.s32.totalorder %s823_s25, 2  ;;  %s522_s26 = sand.u32 1, %s795_s18  }
 0x1f6   : > { %s523_s22 = scalar_lea.sflag [#allocation4], %s522_s26 }
 0x1f7   : > { %p655_p6 = pnand %p658_p5, %p924_p9 }
 0x1f9   : > { %790 = dma.done.wait (!%p655_p6), %s523_s22, 128  }
 0x1fa   : > { %792 = vsyncadd (!%p655_p6), %s523_s22, 4294967168  ;;  %s18_s25 = sadd.s32 1, %s823_s25   ;;  %s1052_s18 = smov %s799_s19 }
 0x1fb   : > { %p15_p7 = scmp.ge.s32.totalorder %s18_s25, 8   ;;  %s1053_s19 = smov %s803_s20 }
 0x1fc   : > { %s1054_s20 = smov %s932_s12  ;;  %s1055_s21 = smov %s815_s23 }
 0x1fd   : > { %s1056_s22 = smov %s819_s24  ;;  %s1057_s23 = smov %s1060_s28 }
 0x1fe   : > { %s1058_s24 = smov %s1064_s29  ;;  %17 = sbr.rel (!%p15_p7) target bundleno = 5 (0x5), region = 118 }
 0x205   :  { %528 = vsyncpa [#allocation4], 1 }
 0x206   :  { %530 = vsyncpa [#allocation4 + $0x1], 1 }

</bundles_post_ra>
